<compile_context>
chip_gen: v5e
topology: v5e:2x2
jax: 0.10.0
libtpu: 0.0.40
codegen_flags: <defaults>
</compile_context>

<pallas_src>
import functools

import jax
import jax.numpy as jnp
import numpy as np
from jax.experimental import pallas as pl
from jax.experimental.pallas import tpu as pltpu

K = 3              # kernel size
STRIDE = 2         # d=2
PAD = 1            # p=1
LEAKY_SLOPE = 0.2  # nn.LeakyReLU(0.2)
EPS = 1e-5         # calc_mean_std eps


def _round_up(x, m):
    return (x + m - 1) // m * m


def _pick_lane_tile(hw_pad, target=1024):
    """Largest multiple of 128 <= target that divides hw_pad (hw_pad is a mult. of 128)."""
    lt = max(128, min(hw_pad, (target // 128) * 128))
    while hw_pad % lt:
        lt -= 128
    return lt


def convmeanvar_kernel(p_ref, w_ref, cb_ref, g_ref, bb_ref,
                       y_ref, mean_ref, std_ref,
                       acc_ref, sum_ref,
                       *, hw, hw_pad, lane_tile, n_hw_tiles):
    """Grid = (batch, hw_tile).  Channel-major (Cout, lanes) layout throughout."""
    t = pl.program_id(1)

    @pl.when(t == 0)
    def _():
        sum_ref[...] = jnp.zeros_like(sum_ref)

    # ---- 1. conv tile = one MXU matmul: bf16 operands, f32 accumulation -----
    acc = jnp.dot(w_ref[...], p_ref[0], preferred_element_type=jnp.float32)  # (Cout, LT)

    # ---- 2. park unnormalized tile in the f32 VMEM accumulator, add sums ----
    # (zero-padded HW lanes are exactly 0, so they add nothing to the sum)
    acc_ref[t] = acc
    sum_ref[...] += jnp.sum(acc, axis=1, keepdims=True)

    # ---- 3. last HW tile: finalize stats, normalize, LeakyReLU, write y -----
    @pl.when(t == n_hw_tiles - 1)
    def _():
        inv_n = 1.0 / float(hw)
        mean0 = sum_ref[...] * inv_n                       # (Cout, 1), bias-free

        # centered two-pass variance over the VMEM-resident tiles
        css = jnp.zeros_like(mean0)
        for j in range(n_hw_tiles):                        # static unrolled sweep
            c = acc_ref[j] - mean0
            css = css + jnp.sum(c * c, axis=1, keepdims=True)
        # remove the (hw_pad - hw) zero-padded lanes' (0 - mean)^2 contribution
        var = (css - float(hw_pad - hw) * mean0 * mean0) * inv_n
        var = jnp.maximum(var, 0.0)
        inv_std = jax.lax.rsqrt(var + EPS)                 # EUP
        std = jnp.sqrt(var + EPS)

        # fused normalize * gamma + beta (conv bias cancels through the norm)
        scale = g_ref[...] * inv_std                       # (Cout, 1)
        shift = bb_ref[...] - mean0 * scale                # (Cout, 1)
        for j in range(n_hw_tiles):                        # static, 128-aligned slices
            yj = acc_ref[j] * scale + shift                # single FMA pass
            yj = jnp.where(yj >= 0.0, yj, LEAKY_SLOPE * yj)
            y_ref[0, :, j * lane_tile:(j + 1) * lane_tile] = yj.astype(y_ref.dtype)

        mean_ref[0] = (mean0 + cb_ref[...]).astype(mean_ref.dtype)  # mean of conv+bias
        std_ref[0] = std.astype(std_ref.dtype)


def conv_meanvar_forward(x_nchw, conv_w, conv_b, norm_scale, norm_bias,
                         *, lane_tile_target=1024):
    """x_nchw: (B, Cin, H, W); conv_w: (Cout, Cin, K, K) [OIHW]; conv_b/norm_*: (Cout,).

    Returns (y, mean, std) with y: (B, Cout, Hout, Wout), mean/std: (B, Cout, 1, 1),
    matching ConvMeanVarBlock.forward (conv in bf16, f32 accumulation).
    """
    B, Cin, H, W = x_nchw.shape
    Cout = conv_w.shape[0]
    Hout = (H + 2 * PAD - K) // STRIDE + 1
    Wout = (W + 2 * PAD - K) // STRIDE + 1
    HW = Hout * Wout
    KK = K * K
    KC = Cin * KK

    hw_pad = _round_up(HW, 128)                     # lane-dense output / store path
    kc_pad = _round_up(KC, 16)                      # bf16 sublane packing on contraction
    lane_tile = _pick_lane_tile(hw_pad, lane_tile_target)
    n_hw_tiles = hw_pad // lane_tile

    # Pure-layout im2col in the wrapper (no arithmetic), done in bf16: (B, 9*Cin, HW).
    xb = x_nchw.astype(jnp.bfloat16)
    xp = jnp.pad(xb, ((0, 0), (0, 0), (PAD, PAD), (PAD, PAD)))
    taps = []
    for kh in range(K):
        for kw in range(K):
            taps.append(xp[:, :, kh:kh + STRIDE * Hout:STRIDE, kw:kw + STRIDE * Wout:STRIDE])
    patches = jnp.stack(taps, axis=2).reshape(B, KC, HW)           # (B, Cin*9, HW)
    patches = jnp.pad(patches, ((0, 0), (0, kc_pad - KC), (0, hw_pad - HW)))

    w2 = jnp.pad(conv_w.reshape(Cout, KC).astype(jnp.bfloat16),
                 ((0, 0), (0, kc_pad - KC)))                        # (Cout, kc_pad)
    cb2 = conv_b.reshape(Cout, 1).astype(jnp.float32)
    g2 = norm_scale.reshape(Cout, 1).astype(jnp.float32)
    bb2 = norm_bias.reshape(Cout, 1).astype(jnp.float32)

    kern = functools.partial(convmeanvar_kernel, hw=HW, hw_pad=hw_pad,
                             lane_tile=lane_tile, n_hw_tiles=n_hw_tiles)

    y_flat, mean, std = pl.pallas_call(
        kern,
        out_shape=(
            jax.ShapeDtypeStruct((B, Cout, hw_pad), x_nchw.dtype),  # y (channel-major)
            jax.ShapeDtypeStruct((B, Cout, 1), jnp.float32),        # mean
            jax.ShapeDtypeStruct((B, Cout, 1), jnp.float32),        # std
        ),
        grid_spec=pltpu.PrefetchScalarGridSpec(
            num_scalar_prefetch=0,
            grid=(B, n_hw_tiles),
            in_specs=[
                # patches: HW-tiled along the lane axis
                pl.BlockSpec((1, kc_pad, lane_tile), lambda b, t: (b, 0, t)),
                pl.BlockSpec((Cout, kc_pad), lambda b, t: (0, 0)),  # conv W (resident)
                pl.BlockSpec((Cout, 1), lambda b, t: (0, 0)),       # conv b
                pl.BlockSpec((Cout, 1), lambda b, t: (0, 0)),       # norm scale
                pl.BlockSpec((Cout, 1), lambda b, t: (0, 0)),       # norm bias
            ],
            out_specs=[
                # outputs revisit the same block across the hw axis (written at last tile)
                pl.BlockSpec((1, Cout, hw_pad), lambda b, t: (b, 0, 0)),
                pl.BlockSpec((1, Cout, 1), lambda b, t: (b, 0, 0)),
                pl.BlockSpec((1, Cout, 1), lambda b, t: (b, 0, 0)),
            ],
            scratch_shapes=[
                pltpu.VMEM((n_hw_tiles, Cout, lane_tile), jnp.float32),  # conv accumulator
                pltpu.VMEM((Cout, 1), jnp.float32),                      # per-channel sums
            ],
        ),
        compiler_params=pltpu.CompilerParams(
            dimension_semantics=("parallel", "arbitrary"),
            vmem_limit_bytes=64 * 1024 * 1024,
        ),
    )(patches, w2, cb2, g2, bb2)

    # Channel-major -> NCHW is a free reshape; lane padding (if any) is sliced off.
    y = y_flat[:, :, :HW].reshape(B, Cout, Hout, Wout)
    return y, mean.reshape(B, Cout, 1, 1), std.reshape(B, Cout, 1, 1)


def _reference(x, conv_w, conv_b, norm_scale, norm_bias):
    """Pure-JAX f32 reference mirroring ConvMeanVarBlock.forward (NCHW)."""
    B, Cin, H, W = x.shape
    Cout = conv_w.shape[0]
    conv = jax.lax.conv_general_dilated(
        x, conv_w, window_strides=(STRIDE, STRIDE), padding=((PAD, PAD), (PAD, PAD)),
        dimension_numbers=("NCHW", "OIHW", "NCHW"),
    ) + conv_b.reshape(1, Cout, 1, 1)
    flat = conv.reshape(B, Cout, -1)
    mean = flat.mean(-1).reshape(B, Cout, 1, 1)
    var = flat.var(-1).reshape(B, Cout, 1, 1)                       # unbiased=False
    std = jnp.sqrt(var + EPS)
    y = (conv - mean) / std
    y = y * norm_scale.reshape(1, Cout, 1, 1) + norm_bias.reshape(1, Cout, 1, 1)
    y = jnp.where(y >= 0.0, y, LEAKY_SLOPE * y)
    return y, mean, std


if __name__ == "__main__":
    B, Cin, Cout, H, W = 2, 4, 8, 16, 16

    key = jax.random.PRNGKey(0)
    k1, k2, k3, k4 = jax.random.split(key, 4)
    x = jax.random.normal(k1, (B, Cin, H, W), jnp.float32)

    # Deterministic synthetic parameters (shapes per ConvMeanVarBlock.__init__).
    conv_w = jax.random.normal(k2, (Cout, Cin, K, K), jnp.float32) * 0.02  # init='default'
    conv_b = jax.random.normal(k3, (Cout,), jnp.float32) * 0.1
    norm_scale = jax.random.normal(k4, (Cout,), jnp.float32) * 0.02 + 1.0  # MyInstanceNorm.scale
    norm_bias = jnp.zeros((Cout,), jnp.float32)                            # MyInstanceNorm.bias

    out = jax.block_until_ready(conv_meanvar_forward(x, conv_w, conv_b, norm_scale, norm_bias))
    ref = jax.block_until_ready(_reference(x, conv_w, conv_b, norm_scale, norm_bias))

    y, mean, std = out
    y_r, m_r, s_r = ref
    Hout = (H + 2 * PAD - K) // STRIDE + 1
    assert y.shape == (B, Cout, Hout, Hout), y.shape
    assert mean.shape == (B, Cout, 1, 1) and std.shape == (B, Cout, 1, 1)
    # Tolerances account for bf16 conv operands (f32 accumulation) vs the f32 reference.
    assert np.allclose(np.asarray(y), np.asarray(y_r), atol=2e-2, rtol=2e-2)
    assert np.allclose(np.asarray(mean), np.asarray(m_r), atol=5e-3, rtol=5e-3)
    assert np.allclose(np.asarray(std), np.asarray(s_r), atol=5e-3, rtol=5e-3)
    print("KERNEL_OK")
</pallas_src>

<mosaic_0001>
module attributes {stable_mosaic.version = 11 : i64} {
  func.func @convmeanvar_kernel(%arg0: i32, %arg1: i32, %arg2: memref<1x48x128xbf16, #tpu.memory_space<vmem>>, %arg3: memref<8x48xbf16, #tpu.memory_space<vmem>>, %arg4: memref<8x1xf32, #tpu.memory_space<vmem>>, %arg5: memref<8x1xf32, #tpu.memory_space<vmem>>, %arg6: memref<8x1xf32, #tpu.memory_space<vmem>>, %arg7: memref<1x8x128xf32, #tpu.memory_space<vmem>>, %arg8: memref<1x8x1xf32, #tpu.memory_space<vmem>>, %arg9: memref<1x8x1xf32, #tpu.memory_space<vmem>>, %arg10: memref<1x8x128xf32, #tpu.memory_space<vmem>>, %arg11: memref<8x1xf32, #tpu.memory_space<vmem>>) attributes {dimension_semantics = [#tpu.dimension_semantics<parallel>, #tpu.dimension_semantics<arbitrary>], iteration_bounds = array<i64: 2, 1>, scalar_prefetch = 0 : i64, scratch_operands = 2 : i64, tpu.core_type = #tpu.core_type<tc>, window_params = [{transform_indices = @transform_0, window_bounds = array<i64: 1, 48, 128>}, {pipeline_mode = #tpu.pipeline_mode<synchronous>, transform_indices = @transform_1, window_bounds = array<i64: 8, 48>}, {pipeline_mode = #tpu.pipeline_mode<synchronous>, transform_indices = @transform_2, window_bounds = array<i64: 8, 1>}, {pipeline_mode = #tpu.pipeline_mode<synchronous>, transform_indices = @transform_3, window_bounds = array<i64: 8, 1>}, {pipeline_mode = #tpu.pipeline_mode<synchronous>, transform_indices = @transform_4, window_bounds = array<i64: 8, 1>}, {transform_indices = @transform_5, window_bounds = array<i64: 1, 8, 128>}, {transform_indices = @transform_6, window_bounds = array<i64: 1, 8, 1>}, {transform_indices = @transform_7, window_bounds = array<i64: 1, 8, 1>}]} {
    %c0_i32 = arith.constant 0 : i32
    %0 = arith.cmpi eq, %arg1, %c0_i32 : i32
    %1 = arith.extui %0 : i1 to i32
    %c0_i32_0 = arith.constant 0 : i32
    %2 = arith.cmpi ne, %1, %c0_i32_0 : i32
    scf.if %2 {
      %cst_14 = arith.constant 0.000000e+00 : f32
      %19 = vector.broadcast %cst_14 : f32 to vector<8x1xf32>
      %c0_15 = arith.constant 0 : index
      %c0_16 = arith.constant 0 : index
      %20 = vector.load %arg11[%c0_15, %c0_16] : memref<8x1xf32, #tpu.memory_space<vmem>>, vector<8x1xf32>
      tpu.vector_store %arg11[%c0_15, %c0_16], %19 {strides = array<i32>} : memref<8x1xf32, #tpu.memory_space<vmem>>, vector<8x1xf32>,
    } else {
    }
    %c0 = arith.constant 0 : index
    %c0_1 = arith.constant 0 : index
    %3 = vector.load %arg3[%c0, %c0_1] : memref<8x48xbf16, #tpu.memory_space<vmem>>, vector<8x48xbf16>
    %c0_2 = arith.constant 0 : index
    %c0_3 = arith.constant 0 : index
    %c0_4 = arith.constant 0 : index
    %4 = vector.load %arg2[%c0_2, %c0_3, %c0_4] : memref<1x48x128xbf16, #tpu.memory_space<vmem>>, vector<1x48x128xbf16>
    %5 = vector.shape_cast %4 : vector<1x48x128xbf16> to vector<48x128xbf16>
    %cst = arith.constant dense<0.000000e+00> : vector<8x128xf32>
    %6 = tpu.matmul %3, %5, %cst {dimension_numbers = #tpu.dot_dimension_numbers<[1], [0], [0], [1], [0, 0, 1, 1], [], []>} : vector<8x48xbf16>, vector<48x128xbf16>, vector<8x128xf32> -> vector<8x128xf32>
    %7 = arith.index_cast %arg1 : i32 to index
    %c0_5 = arith.constant 0 : index
    %c0_6 = arith.constant 0 : index
    %8 = vector.load %arg10[%7, %c0_5, %c0_6] : memref<1x8x128xf32, #tpu.memory_space<vmem>>, vector<1x8x128xf32>
    %9 = vector.shape_cast %8 : vector<1x8x128xf32> to vector<8x128xf32>
    %10 = vector.shape_cast %6 : vector<8x128xf32> to vector<1x8x128xf32>
    tpu.vector_store %arg10[%7, %c0_5, %c0_6], %10 {strides = array<i32>} : memref<1x8x128xf32, #tpu.memory_space<vmem>>, vector<1x8x128xf32>,
    %c0_7 = arith.constant 0 : index
    %c0_8 = arith.constant 0 : index
    %11 = vector.load %arg11[%c0_7, %c0_8] : memref<8x1xf32, #tpu.memory_space<vmem>>, vector<8x1xf32>
    %cst_9 = arith.constant dense<0.000000e+00> : vector<8xf32>
    %12 = vector.multi_reduction <add>, %6, %cst_9 [1] : vector<8x128xf32> to vector<8xf32>
    %13 = vector.shape_cast %12 : vector<8xf32> to vector<8x1xf32>
    %14 = arith.addf %11, %13 : vector<8x1xf32>
    %c0_10 = arith.constant 0 : index
    %c0_11 = arith.constant 0 : index
    %15 = vector.load %arg11[%c0_10, %c0_11] : memref<8x1xf32, #tpu.memory_space<vmem>>, vector<8x1xf32>
    tpu.vector_store %arg11[%c0_10, %c0_11], %14 {strides = array<i32>} : memref<8x1xf32, #tpu.memory_space<vmem>>, vector<8x1xf32>,
    %c0_i32_12 = arith.constant 0 : i32
    %16 = arith.cmpi eq, %arg1, %c0_i32_12 : i32
    %17 = arith.extui %16 : i1 to i32
    %c0_i32_13 = arith.constant 0 : i32
    %18 = arith.cmpi ne, %17, %c0_i32_13 : i32
    scf.if %18 {
      %c0_14 = arith.constant 0 : index
      %c0_15 = arith.constant 0 : index
      %19 = vector.load %arg11[%c0_14, %c0_15] : memref<8x1xf32, #tpu.memory_space<vmem>>, vector<8x1xf32>
      %cst_16 = arith.constant 1.562500e-02 : f32
      %20 = vector.broadcast %cst_16 : f32 to vector<8x1xf32>
      %21 = arith.mulf %19, %20 : vector<8x1xf32>
      %cst_17 = arith.constant 0.000000e+00 : f32
      %22 = vector.broadcast %cst_17 : f32 to vector<8x1xf32>
      %c0_18 = arith.constant 0 : index
      %c0_19 = arith.constant 0 : index
      %c0_20 = arith.constant 0 : index
      %23 = vector.load %arg10[%c0_18, %c0_19, %c0_20] : memref<1x8x128xf32, #tpu.memory_space<vmem>>, vector<1x8x128xf32>
      %24 = vector.shape_cast %23 : vector<1x8x128xf32> to vector<8x128xf32>
      %25 = vector.broadcast %21 : vector<8x1xf32> to vector<8x128xf32>
      %26 = arith.subf %24, %25 : vector<8x128xf32>
      %27 = arith.mulf %26, %26 : vector<8x128xf32>
      %cst_21 = arith.constant dense<0.000000e+00> : vector<8xf32>
      %28 = vector.multi_reduction <add>, %27, %cst_21 [1] : vector<8x128xf32> to vector<8xf32>
      %29 = vector.shape_cast %28 : vector<8xf32> to vector<8x1xf32>
      %30 = arith.addf %22, %29 : vector<8x1xf32>
      %cst_22 = arith.constant 6.400000e+01 : f32
      %31 = vector.broadcast %cst_22 : f32 to vector<8x1xf32>
      %32 = arith.mulf %31, %21 : vector<8x1xf32>
      %33 = arith.mulf %32, %21 : vector<8x1xf32>
      %34 = arith.subf %30, %33 : vector<8x1xf32>
      %cst_23 = arith.constant 1.562500e-02 : f32
      %35 = vector.broadcast %cst_23 : f32 to vector<8x1xf32>
      %36 = arith.mulf %34, %35 : vector<8x1xf32>
      %cst_24 = arith.constant 0.000000e+00 : f32
      %37 = vector.broadcast %cst_24 : f32 to vector<8x1xf32>
      %38 = arith.maximumf %36, %37 : vector<8x1xf32>
      %cst_25 = arith.constant 9.99999974E-6 : f32
      %39 = vector.broadcast %cst_25 : f32 to vector<8x1xf32>
      %40 = arith.addf %38, %39 : vector<8x1xf32>
      %41 = math.rsqrt %40 : vector<8x1xf32>
      %cst_26 = arith.constant 9.99999974E-6 : f32
      %42 = vector.broadcast %cst_26 : f32 to vector<8x1xf32>
      %43 = arith.addf %38, %42 : vector<8x1xf32>
      %44 = math.sqrt %43 : vector<8x1xf32>
      %c0_27 = arith.constant 0 : index
      %c0_28 = arith.constant 0 : index
      %45 = vector.load %arg5[%c0_27, %c0_28] : memref<8x1xf32, #tpu.memory_space<vmem>>, vector<8x1xf32>
      %46 = arith.mulf %45, %41 : vector<8x1xf32>
      %c0_29 = arith.constant 0 : index
      %c0_30 = arith.constant 0 : index
      %47 = vector.load %arg6[%c0_29, %c0_30] : memref<8x1xf32, #tpu.memory_space<vmem>>, vector<8x1xf32>
      %48 = arith.mulf %21, %46 : vector<8x1xf32>
      %49 = arith.subf %47, %48 : vector<8x1xf32>
      %c0_31 = arith.constant 0 : index
      %c0_32 = arith.constant 0 : index
      %c0_33 = arith.constant 0 : index
      %50 = vector.load %arg10[%c0_31, %c0_32, %c0_33] : memref<1x8x128xf32, #tpu.memory_space<vmem>>, vector<1x8x128xf32>
      %51 = vector.shape_cast %50 : vector<1x8x128xf32> to vector<8x128xf32>
      %52 = vector.broadcast %46 : vector<8x1xf32> to vector<8x128xf32>
      %53 = arith.mulf %51, %52 : vector<8x128xf32>
      %54 = vector.broadcast %49 : vector<8x1xf32> to vector<8x128xf32>
      %55 = arith.addf %53, %54 : vector<8x128xf32>
      %cst_34 = arith.constant 0.000000e+00 : f32
      %56 = vector.broadcast %cst_34 : f32 to vector<8x128xf32>
      %57 = arith.cmpf oge, %55, %56 : vector<8x128xf32>
      %cst_35 = arith.constant 2.000000e-01 : f32
      %58 = vector.broadcast %cst_35 : f32 to vector<8x128xf32>
      %59 = arith.mulf %58, %55 : vector<8x128xf32>
      %60 = arith.select %57, %55, %59 : vector<8x128xi1>, vector<8x128xf32>
      %c0_36 = arith.constant 0 : index
      %c0_37 = arith.constant 0 : index
      %c0_38 = arith.constant 0 : index
      %61 = vector.load %arg7[%c0_36, %c0_37, %c0_38] : memref<1x8x128xf32, #tpu.memory_space<vmem>>, vector<1x8x128xf32>
      %62 = vector.shape_cast %61 : vector<1x8x128xf32> to vector<8x128xf32>
      %63 = vector.shape_cast %60 : vector<8x128xf32> to vector<1x8x128xf32>
      tpu.vector_store %arg7[%c0_36, %c0_37, %c0_38], %63 {strides = array<i32>} : memref<1x8x128xf32, #tpu.memory_space<vmem>>, vector<1x8x128xf32>,
      %c0_39 = arith.constant 0 : index
      %c0_40 = arith.constant 0 : index
      %64 = vector.load %arg4[%c0_39, %c0_40] : memref<8x1xf32, #tpu.memory_space<vmem>>, vector<8x1xf32>
      %65 = arith.addf %21, %64 : vector<8x1xf32>
      %c0_41 = arith.constant 0 : index
      %c0_42 = arith.constant 0 : index
      %c0_43 = arith.constant 0 : index
      %66 = vector.load %arg8[%c0_41, %c0_42, %c0_43] : memref<1x8x1xf32, #tpu.memory_space<vmem>>, vector<1x8x1xf32>
      %67 = vector.shape_cast %66 : vector<1x8x1xf32> to vector<8x1xf32>
      %68 = vector.shape_cast %65 : vector<8x1xf32> to vector<1x8x1xf32>
      tpu.vector_store %arg8[%c0_41, %c0_42, %c0_43], %68 {strides = array<i32>} : memref<1x8x1xf32, #tpu.memory_space<vmem>>, vector<1x8x1xf32>,
      %c0_44 = arith.constant 0 : index
      %c0_45 = arith.constant 0 : index
      %c0_46 = arith.constant 0 : index
      %69 = vector.load %arg9[%c0_44, %c0_45, %c0_46] : memref<1x8x1xf32, #tpu.memory_space<vmem>>, vector<1x8x1xf32>
      %70 = vector.shape_cast %69 : vector<1x8x1xf32> to vector<8x1xf32>
      %71 = vector.shape_cast %44 : vector<8x1xf32> to vector<1x8x1xf32>
      tpu.vector_store %arg9[%c0_44, %c0_45, %c0_46], %71 {strides = array<i32>} : memref<1x8x1xf32, #tpu.memory_space<vmem>>, vector<1x8x1xf32>,
    } else {
    }
    return
  }
  func.func @transform_0(%arg0: i32, %arg1: i32) -> (i32, i32, i32) {
    %c0_i32 = arith.constant 0 : i32
    %c0_i32_0 = arith.constant 0 : i32
    return %arg0, %c0_i32, %arg1 : i32, i32, i32
  }
  func.func @transform_1(%arg0: i32, %arg1: i32) -> (i32, i32) {
    %c0_i32 = arith.constant 0 : i32
    %c0_i32_0 = arith.constant 0 : i32
    %c0_i32_1 = arith.constant 0 : i32
    return %c0_i32, %c0_i32_0 : i32, i32
  }
  func.func @transform_2(%arg0: i32, %arg1: i32) -> (i32, i32) {
    %c0_i32 = arith.constant 0 : i32
    %c0_i32_0 = arith.constant 0 : i32
    %c0_i32_1 = arith.constant 0 : i32
    return %c0_i32, %c0_i32_0 : i32, i32
  }
  func.func @transform_3(%arg0: i32, %arg1: i32) -> (i32, i32) {
    %c0_i32 = arith.constant 0 : i32
    %c0_i32_0 = arith.constant 0 : i32
    %c0_i32_1 = arith.constant 0 : i32
    return %c0_i32, %c0_i32_0 : i32, i32
  }
  func.func @transform_4(%arg0: i32, %arg1: i32) -> (i32, i32) {
    %c0_i32 = arith.constant 0 : i32
    %c0_i32_0 = arith.constant 0 : i32
    %c0_i32_1 = arith.constant 0 : i32
    return %c0_i32, %c0_i32_0 : i32, i32
  }
  func.func @transform_5(%arg0: i32, %arg1: i32) -> (i32, i32, i32) {
    %c0_i32 = arith.constant 0 : i32
    %c0_i32_0 = arith.constant 0 : i32
    %c0_i32_1 = arith.constant 0 : i32
    return %arg0, %c0_i32, %c0_i32_0 : i32, i32, i32
  }
  func.func @transform_6(%arg0: i32, %arg1: i32) -> (i32, i32, i32) {
    %c0_i32 = arith.constant 0 : i32
    %c0_i32_0 = arith.constant 0 : i32
    %c0_i32_1 = arith.constant 0 : i32
    return %arg0, %c0_i32, %c0_i32_0 : i32, i32, i32
  }
  func.func @transform_7(%arg0: i32, %arg1: i32) -> (i32, i32, i32) {
    %c0_i32 = arith.constant 0 : i32
    %c0_i32_0 = arith.constant 0 : i32
    %c0_i32_1 = arith.constant 0 : i32
    return %arg0, %c0_i32, %c0_i32_0 : i32, i32, i32
  }
}

</mosaic_0001>

<bundles_post_ra>
// kernel: tpu_custom_call.1
= control target key start
LH: loop header
LB: loop body
LE: loop exit
PB: predicated region body
PF: predicated region fallthrough
CT: control target
= control target key end

     0   :  { %13 = vsyncpa [#allocation5], 0  ;;  %s1035_s0 = inlined_call_operand.hbm [shape: bf16[2,48,128], index: 0, kind: input, shape index: {}]   ;;  %s1036_s1 = inlined_call_operand.vmem [shape: bf16[8,48], index: 1, kind: input, shape index: {}]   ;;  %s1037_s2 = inlined_call_operand.vmem [shape: f32[8,1], index: 2, kind: input, shape index: {}]   ;;  %s1038_s3 = inlined_call_operand.vmem [shape: f32[8,1], index: 3, kind: input, shape index: {}]   ;;  %s1039_s4 = inlined_call_operand.vmem [shape: f32[8,1], index: 4, kind: input, shape index: {}]   ;;  %s1040_s5 = inlined_call_operand.hbm [shape: f32[2,8,128], index: 5, kind: output, shape index: {0}]   ;;  %s1041_s6 = inlined_call_operand.vmem [shape: f32[2,8,1], index: 6, kind: output, shape index: {1}]   ;;  %s1042_s7 = inlined_call_operand.vmem [shape: f32[2,8,1], index: 7, kind: output, shape index: {2}]  }
   0x1   :  { %15 = vsyncpa [#allocation5 + $0x1], 0 }
   0x2   :  { %16 = vsyncpa [#allocation6], 0 }
   0x3   :  { %18 = vsyncpa [#allocation6 + $0x1], 0  ;;  %s883_s24 = smov 0   ;;  %s885_s25 = smov 0  }
   0x4   :  { %s887_s26 = smov 0   ;;  %s889_s27 = smov 0  }
   0x5   :  { %s891_s28 = smov 0   ;;  %s893_s29 = smov 0  }
   0x6 LB: > { %s622_s30 = sadd.s32 4294967295, %s837_s29   ;;  %s623_s8 = sadd.s32 4294967294, %s837_s29   ;;  %s837_s29 = sphi %s893_s29, %s24_s29   ;;  %s833_s28 = sphi %s891_s28, %s1054_s28   ;;  %s829_s27 = sphi %s889_s27, %s1053_s27   ;;  %s825_s26 = sphi %s887_s26, %s1052_s26   ;;  %s821_s25 = sphi %s885_s25, %s1051_s25   ;;  %s817_s24 = sphi %s883_s24, %s1050_s24  }
   0x7   : > { %s36_s9 = sadd.s32 1, %s833_s28  ;;  %s45_s10 = sadd.s32 1, %s825_s26 }
   0x8   : > { %p38_p0 = scmp.ge.s32.totalorder %s36_s9, 2  ;;  %p52_p1 = scmp.ne.s32.totalorder %s825_s26, %s821_s25 }
   0x9   : > { %p53_p2 = scmp.eq.s32.totalorder %s837_s29, 0  ;;  %p58_p3 = scmp.ne.s32.totalorder %s821_s25, %s817_s24 }
   0xa   : > { %s1056_s9 = smov (%p38_p0, %s36_s9), 0  ;;  %p59_p5 = scmp.eq.s32.totalorder %s622_s30, 0 }
   0xb   : > { %1044 = sst [smem:[#allocation10_spill]] %s1056_s9  ;;  %p924_p4 = por %p53_p2, %p52_p1 }
   0xc   : > { %s40_s12 = ssub.s32 %s833_s28, %s1056_s9  ;;  %p166_p6 = scmp.eq.s32.totalorder %s622_s30, 1 }
   0xd   : > { %p43_p7 = scmp.eq.s32.totalorder %s40_s12, 0  ;;  %p930_p8 = por %p59_p5, %p58_p3 }
   0xe   : > { %p934_p9 = por %p166_p6, %p52_p1  ;;  %p172_p10 = scmp.eq.s32.totalorder %s623_s8, 1 }
   0xf   : > { %s939_s15 = scalar_select %p43_p7, %s825_s26, %s45_s10  }
  0x10   : > { %p941_p11 = por %p172_p10, %p58_p3  ;;  %p625_p12 = scmp.ge.s32.totalorder %s837_s29, 2 }
  0x11   : > { %p666_p13 = scmp.lt.s32.totalorder %s837_s29, 2  ;;  %s256_s17 = sand.u32 1, %s825_s26  }
  0x12   : > { %s651_s18 = smul.u32 24, %s256_s17  ;;  %p627_p1 = scmp.ge.s32.totalorder %s837_s29, 1 }
  0x13   : > { %s652_s19 = smul.u32 24, %s833_s28  ;;  %p659_p0 = pnand %p666_p13, %p924_p4 }
  0x14   : > { %s260_s23 = scalar_lea.vmem [#allocation4], %s651_s18  ;;  %s257_s10 = scalar_lea.sflag [#allocation5], %s256_s17 }
  0x15   : > { %s266_s22 = scalar_lea.hbm %s1035_s0, %s652_s19  ;;  %s269_s30 = sshll.u32 %s260_s23, 4  ;;  %s270_s30 = int_to_ptr.vmem [resolvable:$true] %s269_s30 }
  0x16   : > { %s267_s8 = sshll.u32 %s266_s22, 4  ;;  %s839_s12 = smov 64   ;;  %s268_s8 = int_to_ptr.hbm [resolvable:$true] %s267_s8 }
  0x17   : > { %s840_s9 = smov 4   ;;  %p277_p2 = scmp.lt.s32.totalorder %s837_s29, 3 }
  0x18   : > { %661 = dma.hbm_to_vmem [thread:$0]  (!%p659_p0), %s268_s8, 384, %s270_s30, %s257_s10, %s839_s12, %s839_s12, %s840_s9  }
  0x19   : > { %p278_p3 = pnand %p627_p1, %p277_p2 }
  0x1a   : > { %s957_s11 = sand.u32 (!%p278_p3), 1, %s821_s25  }
  0x1b   : > { %281 = sbr.rel (%p278_p3) target bundleno = 687 (0x2af), region = 40  ;;  %s284_s18 = scalar_lea.sflag (!%p278_p3), [#allocation5], %s957_s11 }
  0x1c   : > { %s653_s19 = smul.u32 (!%p278_p3), 24, %s957_s11 }
  0x1e   : > { %s287_s20 = scalar_lea.vmem (!%p278_p3), [#allocation4], %s653_s19 }
  0x20   : > { %808 = dma.done.wait (%p930_p8), %s284_s18, 384  }
  0x21   : > { %810 = vsyncadd (%p930_p8), %s284_s18, 4294966912  ;;  %v650_v0 = vld [vmem:[%s287_s20 + $0x10] sm:$0xff]  ;;  %v649_v1 = vld [vmem:[%s287_s20 + $0x8] sm:$0xff]  ;;  %vm367_vm0 = vcmask 392192   ;;  %vm340_vm1 = vcmask 7168   ;;  %v841_v4 = vmov 0.0  }
  0x22   : > { %376 = vmatpush.bf16.msra.mxu0 %v650_v0  ;;  %v648_v2 = vld [vmem:[%s287_s20] sm:$0xff]  ;;  %341 = vst.msk [vmem:[#allocation3] sm:$0xff] %vm340_vm1, %v841_v4  ;;  %v842_v7 = vmov 0   ;;  %p327_p4 = scmp.lt.s32.totalorder %s829_s27, 1  ;;  %s645_s23 = sshll.u32 %s829_s27, 3 }
  0x23   : > { %v342_v3 = vld [vmem:[%s1036_s1] sm:$0xf]  ;;  %720 = vset.pattern.permute.xlu0 %v842_v7  ;;  %721 = vset.pattern.permute.xlu1 %v842_v7  ;;  %s481_s8 = scalar_lea.hbm %s1040_s5, %s645_s23  ;;  %s463_s18 = scalar_lea.sflag [#allocation6], %s957_s11 }
  0x24   : > { %722 = vset.pattern.permute.xlu2 %v842_v7  ;;  %s972_s13 = scalar_select %p327_p4, %s829_s27, 1  ;;  %v458_v12 = vld [vmem:[%s1037_s2] sm:$0xff] }
  0x25   : > { %v437_v31 = vld [vmem:[%s1038_s3] sm:$0xff]  ;;  %s485_s19 = sshll.u32 %s481_s8, 4  ;;  %s775_s22 = scalar_lea.hbm %s1040_s5, 16  ;;  %s486_s19 = int_to_ptr.hbm [resolvable:$true] %s485_s19 }
  0x26   : > { %377 = vmatpush.bf16.msra.mxu0 %v649_v1  ;;  %s629_s21 = sshll.u32 %s972_s13, 3  ;;  %v439_v37 = vld [vmem:[%s1039_s4] sm:$0xff]  ;;  %s628_s13 = sshll.u32 %s957_s11, 3 }
  0x27   : > { %s330_s10 = scalar_lea.vmem %s1041_s6, %s629_s21  ;;  %s334_s9 = scalar_lea.vmem %s1042_s7, %s629_s21 }
  0x28   : > { %s769_s27 = sshra.s32 %s486_s19, 4  ;;  %s770_s27 = int_to_ptr.hbm [resolvable:$true] %s769_s27 }
  0x29   : > { %v387_v8 = vld [vmem:[#allocation3] sm:$0xff]  ;;  %s771_s20 = scalar_lea.hbm %s770_s27, 8  ;;  %p776_p8 = scmp.lt.s32.totalorder %s770_s27, %s1040_s5 }
  0x2a   : > { %378 = vmatpush.bf16.msra.mxu0 %v648_v2  ;;  %p772_p5 = scmp.ne.s32.totalorder %s770_s27, %s771_s20  ;;  %p777_p10 = scmp.lt.s32.totalorder %s775_s22, %s771_s20 }
  0x2c   : > { %p773_p6 = pnand %p772_p5, %p934_p9  ;;  %p778_p13 = por %p777_p10, %p776_p8 }
  0x2d   : > { %643 = vmatmul.msk.bf16.vlgmr.msra.gmra.mxu0 %vm367_vm0, %v342_v3 }
  0x2e   : > { %p774_p7 = pneg %p773_p6 }
  0x30   : > { %p779_p0 = pnand %p778_p13, %p774_p7 }
  0xaa   : > { %v380_v5 = vpop.f32.mrf.mxu0 }
  0xab   : > { %388 = vadd.xlane.f32.xlu0 %v380_v5 }
  0xb2   : > { %v382_v6 = vpop.f32.mrf.mxu0 }
 0x11e   : > { %v389_v9 = vpop.xlane.xlu0 %388 }
 0x11f   : > { %v390_v10 = vadd.f32 %v389_v9, %v387_v8 }
 0x121   : > { %392 = vst.msk [vmem:[#allocation3] sm:$0xff] %vm340_vm1, %v390_v10 }
 0x128   : > { %v396_v11 = vld [vmem:[#allocation3] sm:$0xff] }
 0x129   : > { %v397_v13 = vmul.f32 0.015625, %v396_v11 }
 0x12b   : > { %401 = vperm.xlu0 %720, %v397_v13   ;;  %v459_v14 = vadd.f32 %v458_v12, %v397_v13  ;;  %v409_v18 = vmul.f32 64.0, %v397_v13 }
 0x12d   : > { %460 = vst.msk [vmem:[%s330_s10] sm:$0xff] %vm340_vm1, %v459_v14  ;;  %v410_v19 = vmul.f32 %v409_v18, %v397_v13  ;;  %s314_s10 = scalar_lea.vmem [#allocation7], %s628_s13 }
 0x12e   : > { %s483_s12 = sshll.u32 %s314_s10, 4  ;;  %s484_s12 = int_to_ptr.vmem [resolvable:$true] %s483_s12 }
 0x19d   : > { %v402_v15 = vpop.permute.xlu0 %401 }
 0x19e   : > { %v404_v16 = vsub.f32 %v380_v5, %v402_v15 }
 0x1a0   : > { %v405_v17 = vmul.f32 %v404_v16, %v404_v16 }
 0x1a2   : > { %406 = vadd.xlane.f32.xlu1 %v405_v17 }
 0x215   : > { %v407_v20 = vpop.xlane.xlu1 %406 }
 0x216   : > { %v411_v21 = vsub.f32 %v407_v20, %v410_v19 }
 0x218   : > { %v412_v22 = vmul.f32 0.015625, %v411_v21 }
 0x21a   : > { %v413_v23 = vmax.f32 %v412_v22, 0.0 }
 0x21c   : > { %v414_v24 = vadd.f32 1e-05, %v413_v23 }
 0x21e   : > { %723 = vrsqrt.f32 %v414_v24  ;;  %vm421_vm3 = vweird.f32 %v414_v24  ;;  %vm432_vm5 = vcmp.eq.f32.partialorder %v414_v24, inf  ;;  %v435_v34 = vand.u32 2147483648, %v414_v24 }
 0x21f   : > { %vm434_vm6 = vcmp.eq.f32.partialorder %v414_v24, 0.0 }
 0x224   : > { %v724_v25 = vpop.eup %723 }
 0x225   : > { %v416_v26 = vmul.f32 %v724_v25, %v414_v24  ;;  %vm422_vm2 = vweird.f32 %v724_v25 }
 0x226   : > { %vm423_vm4 = vmor %vm421_vm3, %vm422_vm2 }
 0x227   : > { %v417_v27 = vmul.f32 %v724_v25, %v416_v26 }
 0x229   : > { %v418_v28 = vmul.f32 0.5, %v417_v27 }
 0x22b   : > { %v419_v29 = vsub.f32 1.5, %v418_v28 }
 0x22d   : > { %v420_v30 = vmul.f32 %v724_v25, %v419_v29 }
 0x22f   : > { %v424_v32 = vsel %vm423_vm4, %v724_v25, %v420_v30  ;;  %v431_v33 = vmul.f32 %v420_v30, %v414_v24 }
 0x230   : > { %v438_v35 = vmul.f32 %v437_v31, %v424_v32 }
 0x231   : > { %v433_v36 = vsel %vm432_vm5, %v414_v24, %v431_v33 }
 0x232   : > { %v436_v38 = vsel %vm434_vm6, %v435_v34, %v433_v36  ;;  %444 = vperm.xlu1 %721, %v438_v35   ;;  %v440_v39 = vmul.f32 %v438_v35, %v397_v13 }
 0x233   : > { %461 = vst.msk [vmem:[%s334_s9] sm:$0xff] %vm340_vm1, %v436_v38 }
 0x234   : > { %v441_v40 = vsub.f32 %v439_v37, %v440_v39 }
 0x236   : > { %450 = vperm.xlu2 %722, %v441_v40  }
 0x290   : > { %v451_v43 = vpop.permute.xlu2 %450 }
 0x2a4   : > { %v445_v41 = vpop.permute.xlu1 %444 }
 0x2a5   : > { %v447_v42 = vmul.f32 %v445_v41, %v380_v5 }
 0x2a7   : > { %v453_v44 = vadd.f32 %v451_v43, %v447_v42 }
 0x2a9   : > { %vm454_vm7 = vcmp.ge.f32.partialorder %v453_v44, 0.0  ;;  %v455_v45 = vmul.f32 0.2, %v453_v44 }
 0x2ab   : > { %v456_v46 = vsel %vm454_vm7, %v453_v44, %v455_v45 }
 0x2ac   : > { %457 = vst [vmem:[%s314_s10] sm:$0xff] %v456_v46 }
 0x2ad   : > { %782 = shalt.err (!%p779_p0)
}
 0x2ae   : > { %656 = dma.vmem_to_hbm [thread:$0]  (%p934_p9), %s484_s12, 128, %s486_s19, %s463_s18  }
 0x2af PF: > { %s503_s11 = sand.u32 1, %s817_s24   ;;  %p663_p1 = pnand %p625_p12, %p941_p11 }
 0x2b0   : > { %s504_s21 = scalar_lea.sflag [#allocation6], %s503_s11 }
 0x2b1   : > { %p664_p2 = pneg %p663_p1 }
 0x2b3   : > { %812 = dma.done.wait (%p664_p2), %s504_s21, 128  }
 0x2b4   : > { %814 = vsyncadd (%p664_p2), %s504_s21, 4294967168  ;;  %s24_s29 = sadd.s32 1, %s837_s29   ;;  %s1049_s14 = sld [smem:[#allocation10_spill]] }
 0x2b5   : > { %p21_p3 = scmp.ge.s32.totalorder %s24_s29, 4   ;;  %s1050_s24 = smov %s821_s25 }
 0x2b6   : > { %s1051_s25 = smov %s825_s26  ;;  %s1052_s26 = smov %s939_s15 }
 0x2b7   : > { %s1053_s27 = smov %s833_s28  ;;  %23 = sbr.rel (!%p21_p3) target bundleno = 6 (0x6), region = 118 }
 0x2ba   : > { %s1054_s28 = smov %s1049_s14 }
 0x2bc   :  { %524 = vsyncpa [#allocation5], 1 }
 0x2bd   :  { %526 = vsyncpa [#allocation5 + $0x1], 1 }
 0x2be   :  { %527 = vsyncpa [#allocation6], 1 }
 0x2bf   :  { %529 = vsyncpa [#allocation6 + $0x1], 1 }

</bundles_post_ra>
